<compile_context>
chip_gen: v6e
topology: v6e:2x2x1
jax: 0.10.0
libtpu: 0.0.40
codegen_flags: <defaults>
</compile_context>

<pallas_src>
import jax
import jax.numpy as jnp
from jax.experimental import pallas as pl
from jax.experimental.pallas import tpu as pltpu

HIDDEN = 128
TILE_N = 512  # rows per grid step; small enough for v7x's scoped VMEM, big
              # enough to amortize the ~0.35us per-step overhead.


def _adcls_kernel(x_ref, w1_ref, b1_ref, w2_ref, b2_ref, o_ref):
    # x_ref : (tile_n, in_dim)    f32  (cast to bf16 for the MXU at load)
    # w1_ref: (in_dim, 128)       bf16
    # b1_ref: (1, 128)            f32
    # w2_ref: (128, out_dim)      bf16
    # b2_ref: (1, out_dim)        f32
    # o_ref : (tile_n, out_dim)   f32
    x = x_ref[...].astype(jnp.bfloat16)
    h = jnp.dot(x, w1_ref[...], preferred_element_type=jnp.float32) + b1_ref[...]
    h = jnp.maximum(h, 0.0)                                   # ReLU (f32)
    y = jnp.dot(h.astype(jnp.bfloat16), w2_ref[...],
                preferred_element_type=jnp.float32) + b2_ref[...]
    o_ref[...] = jax.nn.sigmoid(y)                            # Sigmoid (f32, EUP)


def adcls_head(x, w1, b1, w2, b2):
    """Fused MLP head. x: (..., in_dim) -> (..., out_dim)."""
    in_dim = x.shape[-1]
    out_dim = w2.shape[-1]
    lead = x.shape[:-1]

    xf = x.reshape(-1, in_dim)          # keep original dtype; cast in-kernel
    n = xf.shape[0]

    # Row tile: full array if it fits in one tile (block == full dim is always
    # legal), otherwise fixed 512-row tiles (divisible by 8; ragged last block
    # is masked by Pallas).
    tile_n = n if n <= TILE_N else TILE_N
    grid = (pl.cdiv(n, tile_n),)

    w1b = w1.astype(jnp.bfloat16)
    w2b = w2.astype(jnp.bfloat16)
    b1f = b1.reshape(1, HIDDEN).astype(jnp.float32)
    b2f = b2.reshape(1, out_dim).astype(jnp.float32)

    # VMEM budget: 2x double-buffered x tile + 2x out tile + resident weights,
    # with generous headroom; well under every generation's scoped limit.
    x_tile_bytes = tile_n * in_dim * xf.dtype.itemsize
    o_tile_bytes = tile_n * out_dim * 4
    w_bytes = (in_dim * HIDDEN + HIDDEN * out_dim) * 2 + (HIDDEN + out_dim) * 4
    vmem_limit = max(4 * (2 * x_tile_bytes + 2 * o_tile_bytes + w_bytes),
                     16 * 1024 * 1024)
    vmem_limit = min(vmem_limit, 32 * 1024 * 1024)

    cost = pl.CostEstimate(
        flops=2 * n * (in_dim * HIDDEN + HIDDEN * out_dim),
        transcendentals=n * out_dim,
        bytes_accessed=n * in_dim * xf.dtype.itemsize + n * out_dim * 4 + w_bytes,
    )

    out = pl.pallas_call(
        _adcls_kernel,
        out_shape=jax.ShapeDtypeStruct((n, out_dim), jnp.float32),
        grid=grid,
        in_specs=[
            pl.BlockSpec((tile_n, in_dim), lambda i: (i, 0)),   # x: tiled rows
            pl.BlockSpec((in_dim, HIDDEN), lambda i: (0, 0)),   # w1: resident
            pl.BlockSpec((1, HIDDEN), lambda i: (0, 0)),        # b1: resident
            pl.BlockSpec((HIDDEN, out_dim), lambda i: (0, 0)),  # w2: resident
            pl.BlockSpec((1, out_dim), lambda i: (0, 0)),       # b2: resident
        ],
        out_specs=pl.BlockSpec((tile_n, out_dim), lambda i: (i, 0)),
        compiler_params=pltpu.CompilerParams(
            dimension_semantics=("parallel",),
            vmem_limit_bytes=int(vmem_limit),
        ),
        cost_estimate=cost,
    )(xf, w1b, b1f, w2b, b2f)

    # TODO(synk): if out_dim stays lane-sparse (e.g. 4) and v5e store slot
    # saturates, pad w2/b2/out to 128 lanes and slice after the call.
    return out.reshape(*lead, out_dim)


def init_params(key, in_dim, out_dim):
    """Deterministic init mimicking nn.Linear's U(-1/sqrt(fan_in), 1/sqrt(fan_in))."""
    k1, k2, k3, k4 = jax.random.split(key, 4)
    bound1 = 1.0 / jnp.sqrt(in_dim)
    bound2 = 1.0 / jnp.sqrt(HIDDEN)
    w1 = jax.random.uniform(k1, (in_dim, HIDDEN), jnp.float32, -bound1, bound1)
    b1 = jax.random.uniform(k2, (HIDDEN,), jnp.float32, -bound1, bound1)
    w2 = jax.random.uniform(k3, (HIDDEN, out_dim), jnp.float32, -bound2, bound2)
    b2 = jax.random.uniform(k4, (out_dim,), jnp.float32, -bound2, bound2)
    return w1, b1, w2, b2


if __name__ == "__main__":
    key = jax.random.PRNGKey(0)
    kx, kp = jax.random.split(key)

    batch, seq, in_dim, out_dim = 2, 8, 32, 4
    x = jax.random.normal(kx, (batch, seq, in_dim), jnp.float32)
    w1, b1, w2, b2 = init_params(kp, in_dim, out_dim)

    out = adcls_head(x, w1, b1, w2, b2)
    out = jax.block_until_ready(out)

    # Reference check (plain JAX, f32). Tolerance relaxed because the kernel's
    # matmuls run in bf16 with f32 accumulation.
    ref = jax.nn.sigmoid(jnp.maximum(x @ w1 + b1, 0.0) @ w2 + b2)
    assert out.shape == (batch, seq, out_dim)
    assert jnp.allclose(out, ref, atol=2e-2, rtol=2e-2), (
        float(jnp.max(jnp.abs(out - ref))))

    print("KERNEL_OK")
</pallas_src>

<mosaic_0001>
module attributes {stable_mosaic.version = 11 : i64} {
  func.func @_adcls_kernel(%arg0: i32, %arg1: memref<16x32xf32, #tpu.memory_space<vmem>>, %arg2: memref<32x128xbf16, #tpu.memory_space<vmem>>, %arg3: memref<1x128xf32, #tpu.memory_space<vmem>>, %arg4: memref<128x4xbf16, #tpu.memory_space<vmem>>, %arg5: memref<1x4xf32, #tpu.memory_space<vmem>>, %arg6: memref<16x4xf32, #tpu.memory_space<vmem>>) attributes {dimension_semantics = [#tpu.dimension_semantics<parallel>], iteration_bounds = array<i64: 1>, scalar_prefetch = 0 : i64, scratch_operands = 0 : i64, tpu.core_type = #tpu.core_type<tc>, window_params = [{transform_indices = @transform_0, window_bounds = array<i64: 16, 32>}, {pipeline_mode = #tpu.pipeline_mode<synchronous>, transform_indices = @transform_1, window_bounds = array<i64: 32, 128>}, {pipeline_mode = #tpu.pipeline_mode<synchronous>, transform_indices = @transform_2, window_bounds = array<i64: 1, 128>}, {pipeline_mode = #tpu.pipeline_mode<synchronous>, transform_indices = @transform_3, window_bounds = array<i64: 128, 4>}, {pipeline_mode = #tpu.pipeline_mode<synchronous>, transform_indices = @transform_4, window_bounds = array<i64: 1, 4>}, {transform_indices = @transform_5, window_bounds = array<i64: 16, 4>}]} {
    %c0 = arith.constant 0 : index
    %c0_0 = arith.constant 0 : index
    %0 = vector.load %arg1[%c0, %c0_0] : memref<16x32xf32, #tpu.memory_space<vmem>>, vector<16x32xf32>
    %1 = arith.truncf %0 : vector<16x32xf32> to vector<16x32xbf16>
    %c0_1 = arith.constant 0 : index
    %c0_2 = arith.constant 0 : index
    %2 = vector.load %arg2[%c0_1, %c0_2] : memref<32x128xbf16, #tpu.memory_space<vmem>>, vector<32x128xbf16>
    %cst = arith.constant dense<0.000000e+00> : vector<16x128xf32>
    %3 = tpu.matmul %1, %2, %cst {dimension_numbers = #tpu.dot_dimension_numbers<[1], [0], [0], [1], [0, 0, 1, 1], [], []>} : vector<16x32xbf16>, vector<32x128xbf16>, vector<16x128xf32> -> vector<16x128xf32>
    %c0_3 = arith.constant 0 : index
    %c0_4 = arith.constant 0 : index
    %4 = vector.load %arg3[%c0_3, %c0_4] : memref<1x128xf32, #tpu.memory_space<vmem>>, vector<1x128xf32>
    %5 = vector.broadcast %4 : vector<1x128xf32> to vector<16x128xf32>
    %6 = arith.addf %3, %5 : vector<16x128xf32>
    %cst_5 = arith.constant 0.000000e+00 : f32
    %7 = vector.broadcast %cst_5 : f32 to vector<16x128xf32>
    %8 = arith.maximumf %6, %7 : vector<16x128xf32>
    %9 = arith.truncf %8 : vector<16x128xf32> to vector<16x128xbf16>
    %c0_6 = arith.constant 0 : index
    %c0_7 = arith.constant 0 : index
    %10 = vector.load %arg4[%c0_6, %c0_7] : memref<128x4xbf16, #tpu.memory_space<vmem>>, vector<128x4xbf16>
    %cst_8 = arith.constant dense<0.000000e+00> : vector<16x4xf32>
    %11 = tpu.matmul %9, %10, %cst_8 {dimension_numbers = #tpu.dot_dimension_numbers<[1], [0], [0], [1], [0, 0, 1, 1], [], []>} : vector<16x128xbf16>, vector<128x4xbf16>, vector<16x4xf32> -> vector<16x4xf32>
    %c0_9 = arith.constant 0 : index
    %c0_10 = arith.constant 0 : index
    %12 = vector.load %arg5[%c0_9, %c0_10] : memref<1x4xf32, #tpu.memory_space<vmem>>, vector<1x4xf32>
    %13 = vector.broadcast %12 : vector<1x4xf32> to vector<16x4xf32>
    %14 = arith.addf %11, %13 : vector<16x4xf32>
    %15 = arith.negf %14 : vector<16x4xf32>
    %16 = math.exp %15 : vector<16x4xf32>
    %cst_11 = arith.constant 1.000000e+00 : f32
    %17 = vector.broadcast %cst_11 : f32 to vector<16x4xf32>
    %18 = arith.addf %17, %16 : vector<16x4xf32>
    %19 = arith.divf %17, %18 : vector<16x4xf32>
    %c0_12 = arith.constant 0 : index
    %c0_13 = arith.constant 0 : index
    %20 = vector.load %arg6[%c0_12, %c0_13] : memref<16x4xf32, #tpu.memory_space<vmem>>, vector<16x4xf32>
    tpu.vector_store %arg6[%c0_12, %c0_13], %19 {strides = array<i32>} : memref<16x4xf32, #tpu.memory_space<vmem>>, vector<16x4xf32>,
    return
  }
  func.func @transform_0(%arg0: i32) -> (i32, i32) {
    %c0_i32 = arith.constant 0 : i32
    %c0_i32_0 = arith.constant 0 : i32
    return %arg0, %c0_i32 : i32, i32
  }
  func.func @transform_1(%arg0: i32) -> (i32, i32) {
    %c0_i32 = arith.constant 0 : i32
    %c0_i32_0 = arith.constant 0 : i32
    %c0_i32_1 = arith.constant 0 : i32
    return %c0_i32, %c0_i32_0 : i32, i32
  }
  func.func @transform_2(%arg0: i32) -> (i32, i32) {
    %c0_i32 = arith.constant 0 : i32
    %c0_i32_0 = arith.constant 0 : i32
    %c0_i32_1 = arith.constant 0 : i32
    return %c0_i32, %c0_i32_0 : i32, i32
  }
  func.func @transform_3(%arg0: i32) -> (i32, i32) {
    %c0_i32 = arith.constant 0 : i32
    %c0_i32_0 = arith.constant 0 : i32
    %c0_i32_1 = arith.constant 0 : i32
    return %c0_i32, %c0_i32_0 : i32, i32
  }
  func.func @transform_4(%arg0: i32) -> (i32, i32) {
    %c0_i32 = arith.constant 0 : i32
    %c0_i32_0 = arith.constant 0 : i32
    %c0_i32_1 = arith.constant 0 : i32
    return %c0_i32, %c0_i32_0 : i32, i32
  }
  func.func @transform_5(%arg0: i32) -> (i32, i32) {
    %c0_i32 = arith.constant 0 : i32
    %c0_i32_0 = arith.constant 0 : i32
    return %arg0, %c0_i32 : i32, i32
  }
}

</mosaic_0001>

<bundles_post_ra>
// kernel: tpu_custom_call.1
= control target key start
LH: loop header
LB: loop body
LE: loop exit
PB: predicated region body
PF: predicated region fallthrough
CT: control target
= control target key end

     0   :  { %v301_v0 = vmov 0.0   ;;  %vm302_vm0 = vmmov 0   ;;  %vm47_vm1 = vcmask 261120   ;;  %vm219_vm2 = vcmask 31744   ;;  %s381_s1 = inlined_call_operand.vmem [shape: bf16[32,128], index: 1, kind: input, shape index: {}]   ;;  %s382_s0 = inlined_call_operand.vmem [shape: f32[16,32], index: 0, kind: input, shape index: {}]   ;;  %s383_s3 = inlined_call_operand.vmem [shape: bf16[128,4], index: 3, kind: input, shape index: {}]   ;;  %s384_s2 = inlined_call_operand.vmem [shape: f32[1,128], index: 2, kind: input, shape index: {}]   ;;  %s385_s4 = inlined_call_operand.vmem [shape: f32[1,4], index: 4, kind: input, shape index: {}]   ;;  %s386_s5 = inlined_call_operand.vmem [shape: f32[16,4], index: 5, kind: output, shape index: {}]  }
   0x1   :  { %253 = vmatprep.subr.bf16.mxu0 %v301_v0  ;;  %v283_v1 = vld [vmem:[%s381_s1 + $0x8] sm:$0xff]   ;;  %257 = vmatprep.mubr.msk.bf16.mxu0 %vm302_vm0, %v301_v0  ;;  %v284_v2 = vld [vmem:[%s381_s1] sm:$0xff]   ;;  %v285_v5 = vld [vmem:[%s383_s3 + $0x38] sm:$0xff]  }
   0x2   :  { %261 = vmatprep.subr.bf16.mxu1 %v301_v0  ;;  %277 = vmatprep.mubr.msk.bf16.mxu1 %vm302_vm0, %v301_v0  ;;  %v21_v3 = vld [vmem:[%s382_s0] sm:$0xff]  ;;  %v22_v4 = vld [vmem:[%s382_s0 + $0x8] sm:$0xff]  ;;  %v286_v7 = vld [vmem:[%s383_s3 + $0x30] sm:$0xff]  }
   0x3   :  { %254 = vmatpush3.bf16.msra.mxu0 %v283_v1  ;;  %v23_v6 = vpack.c.bf16 %v22_v4, %v21_v3  ;;  %262 = vmatpush3.bf16.msra.mxu1 %v285_v5  ;;  %v287_v8 = vld [vmem:[%s383_s3 + $0x28] sm:$0xff]   ;;  %v288_v9 = vld [vmem:[%s383_s3 + $0x20] sm:$0xff]   ;;  %v289_v10 = vld [vmem:[%s383_s3 + $0x18] sm:$0xff]  }
   0x4   :  { %255 = vmatprep.subr.bf16.mxu0 %v301_v0  ;;  %263 = vmatprep.subr.bf16.mxu1 %v301_v0  ;;  %v290_v11 = vld [vmem:[%s383_s3 + $0x10] sm:$0xff]   ;;  %v291_v12 = vld [vmem:[%s383_s3 + $0x8] sm:$0xff]   ;;  %v292_v13 = vld [vmem:[%s383_s3] sm:$0xff]  }
   0x5   :  { %v226_v14 = vld [vmem:[%s384_s2] ss:$0 sm:$0xff] }
   0x6   :  { %v230_v24 = vld [vmem:[%s385_s4] ss:$0 sm:$0xff] }
   0x7   :  { %256 = vmatpush3.bf16.msra.mxu0 %v284_v2  ;;  %264 = vmatpush3.bf16.msra.mxu1 %v286_v7 }
   0x8   :  { %265 = vmatprep.subr.bf16.mxu1 %v301_v0 }
   0xa   :  { %258 = vmatmul.mubr.msk.bf16.vlgmr.msra.gmra.mxu0 %vm47_vm1, %v23_v6 }
   0xb   :  { %266 = vmatpush3.bf16.msra.mxu1 %v287_v8 }
   0xc   :  { %267 = vmatprep.subr.bf16.mxu1 %v301_v0 }
   0xf   :  { %268 = vmatpush3.bf16.msra.mxu1 %v288_v9 }
  0x10   :  { %269 = vmatprep.subr.bf16.mxu1 %v301_v0 }
  0x13   :  { %270 = vmatpush3.bf16.msra.mxu1 %v289_v10 }
  0x14   :  { %271 = vmatprep.subr.bf16.mxu1 %v301_v0 }
  0x17   :  { %272 = vmatpush3.bf16.msra.mxu1 %v290_v11 }
  0x18   :  { %273 = vmatprep.subr.bf16.mxu1 %v301_v0 }
  0x1b   :  { %274 = vmatpush3.bf16.msra.mxu1 %v291_v12 }
  0x1c   :  { %275 = vmatprep.subr.bf16.mxu1 %v301_v0 }
  0x1f   :  { %276 = vmatpush3.bf16.msra.mxu1 %v292_v13 }
  0xca   :  { %v85_v15 = vpop.f32.mrf.mxu0 }
  0xcb   :  { %v86_v17 = vadd.f32 %v226_v14, %v85_v15 }
  0xcc   :  { %v259_v16 = vpop.f32.mrf.mxu0 }
  0xcd   :  { %v92_v21 = vmax.f32 %v86_v17, 0.0 }
  0xce   :  { %v88_v18 = vpop.f32.mrf.mxu0 }
  0xcf   :  { %v89_v19 = vadd.f32 %v226_v14, %v88_v18 }
  0xd0   :  { %v260_v20 = vpop.f32.mrf.mxu0 }
  0xd1   :  { %v93_v22 = vmax.f32 %v89_v19, 0.0 }
  0xd3   :  { %v94_v23 = vpack.c.bf16 %v93_v22, %v92_v21 }
  0xd5   :  { %278 = vmatmul.mubr.bf16.vlgmr.msra.gmra.mxu1 %v94_v23 }
 0x195   :  { %v200_v25 = vpop.f32.mrf.mxu1 }
 0x196   :  { %v201_v26 = vadd.f32 %v230_v24, %v200_v25 }
 0x197   :  { %v279_v27 = vpop.f32.mrf.mxu1 }
 0x198   :  { %v239_v28 = vmul.f32 -1.442695, %v201_v26 }
 0x199   :  { %v203_v29 = vpop.f32.mrf.mxu1 }
 0x19a   :  { %293 = vpow2.f32 %v239_v28  ;;  %v204_v30 = vadd.f32 %v230_v24, %v203_v29 }
 0x19b   :  { %v280_v31 = vpop.f32.mrf.mxu1 }
 0x19c   :  { %v240_v32 = vmul.f32 -1.442695, %v204_v30 }
 0x19e   :  { %295 = vpow2.f32 %v240_v32 }
 0x1a7   :  { %v294_v33 = vpop.eup %293 }
 0x1a8   :  { %v213_v34 = vadd.f32 1.0, %v294_v33 }
 0x1aa   :  { %297 = vrcp.f32 %v213_v34 }
 0x1ab   :  { %v296_v35 = vpop.eup %295 }
 0x1ac   :  { %v214_v36 = vadd.f32 1.0, %v296_v35 }
 0x1ae   :  { %299 = vrcp.f32 %v214_v36 }
 0x1b7   :  { %v298_v37 = vpop.eup %297 }
 0x1b8   :  { %220 = vst.msk [vmem:[%s386_s5] sm:$0xff] %vm219_vm2, %v298_v37 }
 0x1bb   :  { %v300_v38 = vpop.eup %299 }
 0x1bc   :  { %221 = vst.msk [vmem:[%s386_s5 + $0x8] sm:$0xff] %vm219_vm2, %v300_v38 }

</bundles_post_ra>
